<compile_context>
chip_gen: v7x
topology: tpu7x:2x2x1
jax: 0.10.0
libtpu: 0.0.40
codegen_flags: <defaults>
</compile_context>

<pallas_src>
import functools

import jax
import jax.numpy as jnp
from jax.experimental import pallas as pl
from jax.experimental.pallas import tpu as pltpu

IN_FEATURES = 1024
OUT_FEATURES = 512


def _linear_kernel(x_ref, wt_ref, b_ref, o_ref):
    # Cast only the small activation tile to bf16; the bf16 weight goes to the
    # MXU untouched.  Accumulation stays in f32.
    x = x_ref[...].astype(jnp.bfloat16)
    y = jnp.dot(x, wt_ref[...], preferred_element_type=jnp.float32)
    o_ref[...] = (y + b_ref[...].astype(jnp.float32)).astype(o_ref.dtype)


def _round_up(n, m):
    return ((n + m - 1) // m) * m


@functools.partial(jax.jit, static_argnames=("block_m", "out_dtype"))
def image_projector_forward(x, w_t, b, *, block_m=1024, out_dtype=None):
    """y = x @ w_t + b   (same math as PyTorch F.linear(x, W, b), w_t = W.T).

    x   : (M, 1024)   f32 or bf16 (cast to bf16 per-tile inside the kernel)
    w_t : (1024, 512) bf16 preferred (halves the dominant HBM transfer) or f32
    b   : (512,) or (1, 512)
    """
    M, K = x.shape
    Kw, N = w_t.shape
    assert K == Kw, (K, Kw)
    b2d = b.reshape(1, N)
    out_dtype = x.dtype if out_dtype is None else out_dtype

    # M tile: at most block_m rows, 8-row (sublane) aligned.  No padding of x:
    # the grid is cdiv-sized and Pallas masks the ragged last tile.
    tm = min(_round_up(block_m, 8), _round_up(M, 8))
    grid_m = pl.cdiv(M, tm)

    # Single-M-tile (small batch): split N into two lane-dense 256-wide halves
    # so both v7x TensorCores are active (harmless extra grid step on v5e/v6e).
    # Multi-tile M: keep N whole so the weight block index is constant and the
    # weight is DMA'd into VMEM exactly once, and x is read exactly once.
    grid_n = 2 if (grid_m == 1 and N % 256 == 0) else 1
    tn = N // grid_n

    out = pl.pallas_call(
        _linear_kernel,
        out_shape=jax.ShapeDtypeStruct((M, N), out_dtype),
        grid=(grid_m, grid_n),
        in_specs=[
            # x: tiled over batch only; block index is constant across the N
            # axis, so Pallas does not re-DMA it between N steps.
            pl.BlockSpec((tm, K), lambda i, j: (i, 0)),
            # weight: constant across M -> fetched once per N tile, resident.
            pl.BlockSpec((K, tn), lambda i, j: (0, j)),
            # bias: one full-lane-width (or half-width) row, fetched once.
            pl.BlockSpec((1, tn), lambda i, j: (0, j)),
        ],
        out_specs=pl.BlockSpec((tm, tn), lambda i, j: (i, j)),  # lane-dense
        compiler_params=pltpu.CompilerParams(
            dimension_semantics=("parallel", "parallel"),
        ),
    )(x, w_t, b2d)
    return out


def init_params(key):
    """Deterministic params mirroring the PyTorch module's __init__.

    - weight: nn.init.xavier_uniform_ on shape (512, 1024)
    - bias:   PyTorch Linear default, U(-1/sqrt(fan_in), 1/sqrt(fan_in))
    """
    kw, kb = jax.random.split(key)
    bound_w = jnp.sqrt(6.0 / (IN_FEATURES + OUT_FEATURES))
    w = jax.random.uniform(
        kw, (OUT_FEATURES, IN_FEATURES), jnp.float32, -bound_w, bound_w
    )
    bound_b = 1.0 / jnp.sqrt(float(IN_FEATURES))
    b = jax.random.uniform(kb, (OUT_FEATURES,), jnp.float32, -bound_b, bound_b)
    return w, b


if __name__ == "__main__":
    key = jax.random.PRNGKey(0)
    k_in, k_param = jax.random.split(key)

    batch = 8  # small batch of image feature vectors
    x = jax.random.normal(k_in, (batch, IN_FEATURES), dtype=jnp.float32)

    w, b = init_params(k_param)
    # Ship the weight half-width; the kernel feeds it to the MXU as bf16.
    w_t_bf16 = w.T.astype(jnp.bfloat16)  # (1024, 512)

    y = image_projector_forward(x, w_t_bf16, b)
    y = jax.block_until_ready(y)
    assert y.shape == (batch, OUT_FEATURES)
    assert y.dtype == x.dtype

    # Semantic check vs. the full-f32 PyTorch-equivalent linear (tolerance
    # covers the bf16 weight/activation operands; accumulation is f32).
    y_ref = jnp.dot(x, w.T, precision=jax.lax.Precision.HIGHEST) + b
    assert jnp.allclose(y, y_ref, atol=5e-2, rtol=5e-2)

    print("KERNEL_OK")
</pallas_src>

<mosaic_0001>
module attributes {stable_mosaic.version = 11 : i64} {
  func.func @_linear_kernel(%arg0: i32, %arg1: i32, %arg2: memref<8x1024xf32, #tpu.memory_space<vmem>>, %arg3: memref<1024x256xbf16, #tpu.memory_space<vmem>>, %arg4: memref<1x256xf32, #tpu.memory_space<vmem>>, %arg5: memref<8x256xf32, #tpu.memory_space<vmem>>) attributes {dimension_semantics = [#tpu.dimension_semantics<parallel>, #tpu.dimension_semantics<parallel>], iteration_bounds = array<i64: 1, 2>, scalar_prefetch = 0 : i64, scratch_operands = 0 : i64, tpu.core_type = #tpu.core_type<tc>, window_params = [{transform_indices = @transform_0, window_bounds = array<i64: 8, 1024>}, {transform_indices = @transform_1, window_bounds = array<i64: 1024, 256>}, {transform_indices = @transform_2, window_bounds = array<i64: 1, 256>}, {transform_indices = @transform_3, window_bounds = array<i64: 8, 256>}]} {
    %c0 = arith.constant 0 : index
    %c0_0 = arith.constant 0 : index
    %0 = vector.load %arg2[%c0, %c0_0] : memref<8x1024xf32, #tpu.memory_space<vmem>>, vector<8x1024xf32>
    %1 = arith.truncf %0 : vector<8x1024xf32> to vector<8x1024xbf16>
    %c0_1 = arith.constant 0 : index
    %c0_2 = arith.constant 0 : index
    %2 = vector.load %arg3[%c0_1, %c0_2] : memref<1024x256xbf16, #tpu.memory_space<vmem>>, vector<1024x256xbf16>
    %cst = arith.constant dense<0.000000e+00> : vector<8x256xf32>
    %3 = tpu.matmul %1, %2, %cst {dimension_numbers = #tpu.dot_dimension_numbers<[1], [0], [0], [1], [0, 0, 1, 1], [], []>} : vector<8x1024xbf16>, vector<1024x256xbf16>, vector<8x256xf32> -> vector<8x256xf32>
    %c0_3 = arith.constant 0 : index
    %c0_4 = arith.constant 0 : index
    %4 = vector.load %arg4[%c0_3, %c0_4] : memref<1x256xf32, #tpu.memory_space<vmem>>, vector<1x256xf32>
    %5 = vector.broadcast %4 : vector<1x256xf32> to vector<8x256xf32>
    %6 = arith.addf %3, %5 : vector<8x256xf32>
    %c0_5 = arith.constant 0 : index
    %c0_6 = arith.constant 0 : index
    %7 = vector.load %arg5[%c0_5, %c0_6] : memref<8x256xf32, #tpu.memory_space<vmem>>, vector<8x256xf32>
    tpu.vector_store %arg5[%c0_5, %c0_6], %6 {strides = array<i32>} : memref<8x256xf32, #tpu.memory_space<vmem>>, vector<8x256xf32>,
    return
  }
  func.func @transform_0(%arg0: i32, %arg1: i32) -> (i32, i32) {
    %c0_i32 = arith.constant 0 : i32
    %c0_i32_0 = arith.constant 0 : i32
    return %arg0, %c0_i32 : i32, i32
  }
  func.func @transform_1(%arg0: i32, %arg1: i32) -> (i32, i32) {
    %c0_i32 = arith.constant 0 : i32
    %c0_i32_0 = arith.constant 0 : i32
    return %c0_i32, %arg1 : i32, i32
  }
  func.func @transform_2(%arg0: i32, %arg1: i32) -> (i32, i32) {
    %c0_i32 = arith.constant 0 : i32
    %c0_i32_0 = arith.constant 0 : i32
    return %c0_i32, %arg1 : i32, i32
  }
  func.func @transform_3(%arg0: i32, %arg1: i32) -> (i32, i32) {
    %c0_i32 = arith.constant 0 : i32
    return %arg0, %arg1 : i32, i32
  }
}

</mosaic_0001>

<bundles_post_ra>
// kernel: image_projector_forward.1
= control target key start
LH: loop header
LB: loop body
LE: loop exit
PB: predicated region body
PF: predicated region fallthrough
CT: control target
= control target key end

     0   :  { %8 = vsyncpa [#allocation3], 0  ;;  %s2282_s0 = inlined_call_operand.hbm [shape: f32[8,1024], index: 0, kind: input, shape index: {}]   ;;  %s2283_s1 = inlined_call_operand.hbm [shape: bf16[1024,512], index: 1, kind: input, shape index: {}]   ;;  %s2284_s2 = inlined_call_operand.vmem [shape: f32[1,512], index: 2, kind: input, shape index: {}]   ;;  %s2285_s3 = inlined_call_operand.hbm [shape: f32[8,512], index: 3, kind: output, shape index: {}]  }
   0x1   :  { %9 = vsyncpa [#allocation6], 0 }
   0x2   :  { %11 = vsyncpa [#allocation6 + $0x1], 0 }
   0x3   :  { %12 = vsyncpa [#allocation4], 0 }
   0x4   :  { %14 = vsyncpa [#allocation4 + $0x1], 0  ;;  %s1928_s12 = smov 0   ;;  %s1930_s13 = smov 0  }
   0x5   :  { %s1932_s14 = smov 0   ;;  %s1934_s15 = smov 0  }
   0x6   :  { %s1936_s16 = smov 0   ;;  %s1938_s17 = smov 0  }
   0x7 LB: > { %s1328_s18 = sadd.s32 4294967295, %s1900_s17   ;;  %s1329_s19 = sadd.s32 4294967294, %s1900_s17   ;;  %s1900_s17 = sphi %s1938_s17, %s20_s17   ;;  %s1896_s16 = sphi %s1936_s16, %s2313_s16   ;;  %s1892_s15 = sphi %s1934_s15, %s2312_s15   ;;  %s1888_s14 = sphi %s1932_s14, %s2311_s14   ;;  %s1884_s13 = sphi %s1930_s13, %s2310_s13   ;;  %s1880_s12 = sphi %s1928_s12, %s2309_s12  }
   0x8   : > { %s65_s20 = sadd.s32 1, %s1888_s14  ;;  %p72_p0 = scmp.ne.s32.totalorder %s1888_s14, %s1884_s13 }
   0x9   : > { %p73_p1 = scmp.eq.s32.totalorder %s1900_s17, 0  ;;  %p78_p2 = scmp.ne.s32.totalorder %s1884_s13, %s1880_s12 }
   0xa   : > { %p1966_p3 = scmp.eq.s32.totalorder %s1328_s18, 0  ;;  %p130_p4 = scmp.eq.s32.totalorder %s1328_s18, 1 }
   0xb   : > { %p1970_p5 = por %p73_p1, %p72_p0  ;;  %p136_p6 = scmp.eq.s32.totalorder %s1329_s19, 1 }
   0xc   : > { %s2292_s21 = scalar_select %p1966_p3, 1, 0 }
   0xd   : > { %p1976_p7 = por %p1966_p3, %p78_p2  ;;  %p1980_p8 = por %p130_p4, %p72_p0 }
   0xe   : > { %p1984_p9 = por %p136_p6, %p78_p2  ;;  %p1330_p10 = scmp.ge.s32.totalorder %s1900_s17, 1 }
   0xf   : > { %s2294_s23 = scalar_select %p1976_p7, 1, 0 }
  0x10   : > { %s2295_s24 = scalar_select %p1980_p8, 1, 0 }
  0x11   : > { %s2296_s25 = scalar_select %p1984_p9, 1, 0 }
  0x12   : > { %p143_p11 = scmp.lt.s32.totalorder %s1900_s17, 3  ;;  %s1902_s27 = smov [#allocation2]  }
  0x13   : > { %s159_s28 = sshll.u32 %s1902_s27, 4  ;;  %p1509_p1 = scmp.lt.s32.totalorder %s1900_s17, 2  ;;  %s160_s28 = int_to_ptr.vmem [resolvable:$true] %s159_s28 }
  0x14   : > { %p1991_p13 = pnand %p1330_p10, %p143_p11  ;;  %s29_s4 = sadd.s32 1, %s1896_s16 }
  0x15   : > { %p2000_p4 = pnand %p1509_p1, %p1970_p5  ;;  %p2011_p6 = scmp.ge.s32.totalorder %s29_s4, 2 }
  0x16   : > { %s2297_s26 = scalar_select %p1991_p13, 1, 0 }
  0x17   : > { %p1496_p0 = pneg %p1991_p13  ;;  %s170_s6 = sand.u32 1, %s1888_s14  }
  0x18   : > { %s2298_s29 = scalar_select %p2000_p4, 1, 0 }
  0x19   : > { %p2006_p2 = pnand %p1496_p0, %p1966_p3  ;;  %s1756_s9 = scalar_lea.hbm %s2282_s0, 1024 }
  0x1a   : > { %s2300_s5 = scalar_select %p2011_p6, 1, 0 }
  0x1b   : > { %p1757_p5 = scmp.ne.s32.totalorder %s2282_s0, %s1756_s9  ;;  %p1758_p10 = pneg %p2006_p2 }
  0x1c   : > { %p1763_p0 = scmp.lt.u32.totalorder %s1756_s9, %s2282_s0 }
  0x1d   : > { %p1759_p11 = pnand %p1758_p10, %p1757_p5 }
  0x1f   : > { %p1760_p1 = pneg %p1759_p11 }
  0x21   : > { %p1765_p12 = pnand %p1763_p0, %p1760_p1 }
  0x23   : > { %1768 = shalt.err (!%p1765_p12)
}
  0x24   : > { %s1769_s22 = scalar_lea.vmem %s160_s28, 1024  ;;  %p1777_p3 = scmp.lt.s32.totalorder %s160_s28, %s160_s28 }
  0x25   : > { %p1770_p9 = scmp.ne.s32.totalorder %s160_s28, %s1769_s22  ;;  %p1778_p13 = scmp.lt.s32.totalorder %s1769_s22, %s1769_s22 }
  0x27   : > { %p1772_p8 = pnand %p1770_p9, %p1758_p10  ;;  %p1779_p4 = por %p1778_p13, %p1777_p3 }
  0x29   : > { %p1773_p7 = pneg %p1772_p8 }
  0x2b   : > { %p1780_p6 = pnand %p1779_p4, %p1773_p7 }
  0x2d   : > { %1783 = shalt.err (!%p1780_p6)
}
  0x2e   : > { %1499 = dma.hbm_to_vmem [thread:$0]  (!%p2006_p2), %s2282_s0, 1024, %s160_s28, [#allocation3]  }
  0x2f   : > { %p2301_p9 = scmp.ne.s32.totalorder %s2300_s5, 0  ;;  %s1333_s8 = sshll.u32 %s170_s6, 10 }
  0x30   : > { %s1474_s10 = sshll.u32 %s1896_s16, 7  ;;  %s174_s19 = scalar_lea.vmem [#allocation5], %s1333_s8 }
  0x31   : > { %s2315_s4 = smov (%p2301_p9, %s29_s4), 0  ;;  %s2042_s18 = scalar_lea.hbm %s2283_s1, %s1474_s10 }
  0x32   : > { %s62_s9 = ssub.s32 %s1896_s16, %s2315_s4  ;;  %s181_s22 = sshll.u32 %s174_s19, 4  ;;  %s2049_s22 = int_to_ptr.vmem [resolvable:$true] %s181_s22 }
  0x33   : > { %p63_p3 = scmp.eq.s32.totalorder %s62_s9, 0  ;;  %s2051_s5 = scalar_lea.sflag [#allocation6], %s170_s6 }
  0x34   : > { %s1784_s27 = scalar_lea.hbm %s2042_s18, 16384  ;;  %p2302_p8 = scmp.ne.s32.totalorder %s2298_s29, 0 }
  0x35   : > { %s2047_s28 = scalar_select %p63_p3, %s1888_s14, %s65_s20  }
  0x36   : > { %p1785_p7 = scmp.ne.s32.totalorder %s2042_s18, %s1784_s27  ;;  %p1786_p12 = pneg %p2302_p8 }
  0x37   : > { %s1789_s8 = scalar_lea.hbm %s2283_s1, 32768  ;;  %p1790_p2 = scmp.lt.u32.totalorder %s2042_s18, %s2283_s1 }
  0x38   : > { %p1787_p13 = pnand %p1786_p12, %p1785_p7  ;;  %p1791_p6 = scmp.lt.u32.totalorder %s1789_s8, %s1784_s27 }
  0x39   : > { %p1793_p10 = scmp.lt.u32.totalorder %s1784_s27, %s2042_s18 }
  0x3a   : > { %p1788_p4 = pneg %p1787_p13  ;;  %p1792_p5 = por %p1791_p6, %p1790_p2 }
  0x3c   : > { %p1794_p11 = por %p1793_p10, %p1792_p5 }
  0x3e   : > { %p1795_p1 = pnand %p1794_p11, %p1788_p4 }
  0x40   : > { %1798 = shalt.err (!%p1795_p1)
}
  0x41   : > { %s1799_s20 = scalar_lea.vmem %s2049_s22, 16384  ;;  %s1903_s6 = smov [#allocation5]  }
  0x42   : > { %p1800_p0 = scmp.ne.s32.totalorder %s2049_s22, %s1799_s20  ;;  %s1804_s11 = sshll.u32 %s1903_s6, 4  ;;  %s1805_s11 = int_to_ptr.vmem [resolvable:$false] %s1804_s11 }
  0x43   : > { %s1806_s19 = scalar_lea.vmem %s1805_s11, 32768  ;;  %p1807_p7 = scmp.lt.s32.totalorder %s2049_s22, %s1805_s11 }
  0x44   : > { %p1802_p9 = pnand %p1800_p0, %p1786_p12  ;;  %p1808_p13 = scmp.lt.s32.totalorder %s1806_s19, %s1799_s20 }
  0x46   : > { %p1803_p3 = pneg %p1802_p9  ;;  %p1809_p2 = por %p1808_p13, %p1807_p7 }
  0x48   : > { %p1810_p6 = pnand %p1809_p2, %p1803_p3 }
  0x4a   : > { %1813 = shalt.err (!%p1810_p6)
}
  0x4b   : > { %s1904_s27 = smov 256   ;;  %s1905_s7 = smov 128  }
  0x4c   : > { %s1906_s9 = smov 8   ;;  %p2303_p12 = scmp.ne.s32.totalorder %s2297_s26, 0 }
  0x4d   : > { %1503 = dma.hbm_to_vmem [thread:$0]  (!%p2302_p8), %s2042_s18, 16384, %s2049_s22, %s2051_s5, %s1904_s27, %s1905_s7, %s1906_s9  }
  0x4e   : > { %201 = sbr.rel (%p2303_p12) target bundleno = 450 (0x1c2), region = 32  ;;  %p2304_p4 = scmp.ne.s32.totalorder (!%p2303_p12), %s2292_s21, 0 }
  0x55   : > { %1867 = dma.done.wait (%p2304_p4), [#allocation3], 1024  }
  0x56   : > { %1869 = vsyncadd (%p2304_p4), [#allocation3], 4294966272  ;;  %s2086_s8 = sand.u32 1, %s1884_s13   ;;  %p2305_p8 = scmp.ne.s32.totalorder %s2294_s23, 0 }
  0x57   : > { %s1338_s10 = sshll.u32 %s2086_s8, 10  ;;  %s208_s30 = scalar_lea.sflag [#allocation6], %s2086_s8 }
  0x58   : > { %s2090_s20 = scalar_lea.vmem [#allocation5], %s1338_s10 }
  0x59   : > { %1871 = dma.done.wait (%p2305_p8), %s208_s30, 16384  }
  0x5a   : > { %1873 = vsyncadd (%p2305_p8), %s208_s30, 4294950912  ;;  %v1564_v0 = vld [vmem:[%s2090_s20 + $0x4] ss:$8 sps:$4 sm:$0xff]   ;;  %v1568_v2 = vld [vmem:[%s2090_s20] ss:$8 sps:$4 sm:$0xff]   ;;  %s1340_s21 = sshll.u32 %s1892_s15, 1 }
  0x5b   : > { %v1566_v1 = vld [vmem:[%s2090_s20 + $0x204] ss:$8 sps:$4 sm:$0xff]   ;;  %1041 = vmatprep.subr.bf16.mxu1 %v1564_v0  ;;  %v1569_v3 = vld [vmem:[%s2090_s20 + $0x200] ss:$8 sps:$4 sm:$0xff]   ;;  %v1570_v4 = vld [vmem:[%s2090_s20 + $0x14] ss:$8 sps:$4 sm:$0xff]  }
  0x5c   : > { %1123 = vmatprep.subr.bf16.mxu0 %v1566_v1  ;;  %1042 = vmatpush1.bf16.msra.mxu1 %v1568_v2  ;;  %v1572_v5 = vld [vmem:[%s2090_s20 + $0x214] ss:$8 sps:$4 sm:$0xff]   ;;  %v1574_v6 = vld [vmem:[%s2090_s20 + $0x10] ss:$8 sps:$4 sm:$0xff]   ;;  %v1576_v8 = vld [vmem:[%s2090_s20 + $0x24] ss:$8 sps:$4 sm:$0xff]  }
  0x5d   : > { %1124 = vmatpush1.bf16.msra.mxu0 %v1569_v3  ;;  %1043 = vmatprep.subr.bf16.mxu1 %v1570_v4  ;;  %v1575_v7 = vld [vmem:[%s2090_s20 + $0x210] ss:$8 sps:$4 sm:$0xff]   ;;  %v1578_v9 = vld [vmem:[%s2090_s20 + $0x224] ss:$8 sps:$4 sm:$0xff]   ;;  %v1580_v10 = vld [vmem:[%s2090_s20 + $0x20] ss:$8 sps:$4 sm:$0xff]  }
  0x5e   : > { %1125 = vmatprep.subr.bf16.mxu0 %v1572_v5  ;;  %v1581_v11 = vld [vmem:[%s2090_s20 + $0x220] ss:$8 sps:$4 sm:$0xff]   ;;  %v1582_v12 = vld [vmem:[%s2090_s20 + $0x34] ss:$8 sps:$4 sm:$0xff]   ;;  %v1586_v14 = vld [vmem:[%s2090_s20 + $0x30] ss:$8 sps:$4 sm:$0xff]  }
  0x5f   : > { %v1584_v13 = vld [vmem:[%s2090_s20 + $0x234] ss:$8 sps:$4 sm:$0xff]   ;;  %v1587_v15 = vld [vmem:[%s2090_s20 + $0x230] ss:$8 sps:$4 sm:$0xff]   ;;  %v1588_v16 = vld [vmem:[%s2090_s20 + $0x44] ss:$8 sps:$4 sm:$0xff]  }
  0x60   : > { %1044 = vmatpush1.bf16.msra.mxu1 %v1574_v6  ;;  %v1590_v17 = vld [vmem:[%s2090_s20 + $0x244] ss:$8 sps:$4 sm:$0xff]   ;;  %v1592_v18 = vld [vmem:[%s2090_s20 + $0x40] ss:$8 sps:$4 sm:$0xff]   ;;  %v1594_v20 = vld [vmem:[%s2090_s20 + $0x54] ss:$8 sps:$4 sm:$0xff]  }
  0x61   : > { %1126 = vmatpush1.bf16.msra.mxu0 %v1575_v7  ;;  %1045 = vmatprep.subr.bf16.mxu1 %v1576_v8  ;;  %v1593_v19 = vld [vmem:[%s2090_s20 + $0x240] ss:$8 sps:$4 sm:$0xff]   ;;  %v1596_v21 = vld [vmem:[%s2090_s20 + $0x254] ss:$8 sps:$4 sm:$0xff]   ;;  %v1598_v22 = vld [vmem:[%s2090_s20 + $0x50] ss:$8 sps:$4 sm:$0xff]  }
  0x62   : > { %1127 = vmatprep.subr.bf16.mxu0 %v1578_v9  ;;  %v1599_v23 = vld [vmem:[%s2090_s20 + $0x250] ss:$8 sps:$4 sm:$0xff]   ;;  %v1600_v24 = vld [vmem:[%s2090_s20 + $0x64] ss:$8 sps:$4 sm:$0xff]   ;;  %v1604_v26 = vld [vmem:[%s2090_s20 + $0x60] ss:$8 sps:$4 sm:$0xff]  }
  0x63   : > { %v1602_v25 = vld [vmem:[%s2090_s20 + $0x264] ss:$8 sps:$4 sm:$0xff]   ;;  %v1605_v27 = vld [vmem:[%s2090_s20 + $0x260] ss:$8 sps:$4 sm:$0xff]   ;;  %v1606_v28 = vld [vmem:[%s2090_s20 + $0x74] ss:$8 sps:$4 sm:$0xff]  }
  0x64   : > { %1046 = vmatpush1.bf16.msra.mxu1 %v1580_v10  ;;  %v1608_v29 = vld [vmem:[%s2090_s20 + $0x274] ss:$8 sps:$4 sm:$0xff]   ;;  %v1610_v30 = vld [vmem:[%s2090_s20 + $0x70] ss:$8 sps:$4 sm:$0xff]   ;;  %v1612_v32 = vld [vmem:[%s2090_s20 + $0x84] ss:$8 sps:$4 sm:$0xff]  }
  0x65   : > { %1128 = vmatpush1.bf16.msra.mxu0 %v1581_v11  ;;  %1047 = vmatprep.subr.bf16.mxu1 %v1582_v12  ;;  %v1611_v31 = vld [vmem:[%s2090_s20 + $0x270] ss:$8 sps:$4 sm:$0xff]   ;;  %v1614_v33 = vld [vmem:[%s2090_s20 + $0x284] ss:$8 sps:$4 sm:$0xff]   ;;  %v1616_v34 = vld [vmem:[%s2090_s20 + $0x80] ss:$8 sps:$4 sm:$0xff]  }
  0x66   : > { %1129 = vmatprep.subr.bf16.mxu0 %v1584_v13  ;;  %v1617_v35 = vld [vmem:[%s2090_s20 + $0x280] ss:$8 sps:$4 sm:$0xff]   ;;  %v1618_v36 = vld [vmem:[%s2090_s20 + $0x94] ss:$8 sps:$4 sm:$0xff]   ;;  %v1622_v38 = vld [vmem:[%s2090_s20 + $0x90] ss:$8 sps:$4 sm:$0xff]  }
  0x67   : > { %v1620_v37 = vld [vmem:[%s2090_s20 + $0x294] ss:$8 sps:$4 sm:$0xff]   ;;  %v1623_v39 = vld [vmem:[%s2090_s20 + $0x290] ss:$8 sps:$4 sm:$0xff]   ;;  %v1624_v40 = vld [vmem:[%s2090_s20 + $0xa4] ss:$8 sps:$4 sm:$0xff]  }
  0x68   : > { %1048 = vmatpush1.bf16.msra.mxu1 %v1586_v14  ;;  %v1626_v41 = vld [vmem:[%s2090_s20 + $0x2a4] ss:$8 sps:$4 sm:$0xff]   ;;  %v1628_v42 = vld [vmem:[%s2090_s20 + $0xa0] ss:$8 sps:$4 sm:$0xff]   ;;  %v1630_v44 = vld [vmem:[%s2090_s20 + $0xb4] ss:$8 sps:$4 sm:$0xff]  }
  0x69   : > { %1130 = vmatpush1.bf16.msra.mxu0 %v1587_v15  ;;  %1049 = vmatprep.subr.bf16.mxu1 %v1588_v16  ;;  %v1629_v43 = vld [vmem:[%s2090_s20 + $0x2a0] ss:$8 sps:$4 sm:$0xff]   ;;  %v1632_v45 = vld [vmem:[%s2090_s20 + $0x2b4] ss:$8 sps:$4 sm:$0xff]   ;;  %v1634_v47 = vld [vmem:[%s2090_s20 + $0xb0] ss:$8 sps:$4 sm:$0xff]  }
  0x6a   : > { %1131 = vmatprep.subr.bf16.mxu0 %v1590_v17  ;;  %v246_v46 = vld [vmem:[#allocation2 + $0x8] sm:$0xff]  ;;  %v1635_v49 = vld [vmem:[%s2090_s20 + $0x2b0] ss:$8 sps:$4 sm:$0xff]   ;;  %v1642_v56 = vld [vmem:[%s2090_s20 + $0xd4] ss:$8 sps:$4 sm:$0xff]   ;;  %p240_p5 = scmp.lt.s32.totalorder %s1340_s21, 3 }
  0x6b   : > { %v254_v48 = vpack.c.bf16 %v246_v46, %v246_v46  ;;  %v250_v50 = vld [vmem:[#allocation2 + $0x28] sm:$0xff]  ;;  %v1644_v57 = vld [vmem:[%s2090_s20 + $0x2d4] ss:$8 sps:$4 sm:$0xff]   ;;  %v1646_v58 = vld [vmem:[%s2090_s20 + $0xd0] ss:$8 sps:$4 sm:$0xff]   ;;  %s1339_s18 = sshll.u32 %s2086_s8, 4 }
  0x6c   : > { %1050 = vmatpush1.bf16.msra.mxu1 %v1592_v18  ;;  %v1636_v51 = vld [vmem:[%s2090_s20 + $0xc4] ss:$8 sps:$4 sm:$0xff]   ;;  %v258_v53 = vpack.c.bf16 %v250_v50, %v250_v50  ;;  %v1640_v54 = vld [vmem:[%s2090_s20 + $0xc0] ss:$8 sps:$4 sm:$0xff]   ;;  %v1647_v59 = vld [vmem:[%s2090_s20 + $0x2d0] ss:$8 sps:$4 sm:$0xff]  }
  0x6d   : > { %1132 = vmatpush1.bf16.msra.mxu0 %v1593_v19  ;;  %1051 = vmatprep.subr.bf16.mxu1 %v1594_v20  ;;  %v1638_v52 = vld [vmem:[%s2090_s20 + $0x2c4] ss:$8 sps:$4 sm:$0xff]   ;;  %v1641_v55 = vld [vmem:[%s2090_s20 + $0x2c0] ss:$8 sps:$4 sm:$0xff]   ;;  %v1654_v0 = vld [vmem:[%s2090_s20 + $0xf4] ss:$8 sps:$4 sm:$0xff]  }
  0x6e   : > { %1133 = vmatprep.subr.bf16.mxu0 %v1596_v21  ;;  %1073 = vmatprep.mubr.bf16.mxu1 %v254_v48  ;;  %v1648_v60 = vld [vmem:[%s2090_s20 + $0xe4] ss:$8 sps:$4 sm:$0xff]   ;;  %v1652_v62 = vld [vmem:[%s2090_s20 + $0xe0] ss:$8 sps:$4 sm:$0xff]   ;;  %v1656_v1 = vld [vmem:[%s2090_s20 + $0x2f4] ss:$8 sps:$4 sm:$0xff]  }
  0x6f   : > { %1155 = vmatprep.mubr.bf16.mxu0 %v258_v53  ;;  %v1650_v61 = vld [vmem:[%s2090_s20 + $0x2e4] ss:$8 sps:$4 sm:$0xff]   ;;  %v1653_v63 = vld [vmem:[%s2090_s20 + $0x2e0] ss:$8 sps:$4 sm:$0xff]   ;;  %v1658_v2 = vld [vmem:[%s2090_s20 + $0xf0] ss:$8 sps:$4 sm:$0xff]  }
  0x70   : > { %1052 = vmatpush1.bf16.msra.mxu1 %v1598_v22  ;;  %v1659_v3 = vld [vmem:[%s2090_s20 + $0x2f0] ss:$8 sps:$4 sm:$0xff]   ;;  %v1662_v4 = vld [vmem:[%s2090_s20 + $0x104] ss:$8 sps:$4 sm:$0xff]   ;;  %v1660_v8 = vld [vmem:[%s2090_s20 + $0x100] ss:$8 sps:$4 sm:$0xff]  }
  0x71   : > { %1134 = vmatpush1.bf16.msra.mxu0 %v1599_v23  ;;  %1053 = vmatprep.subr.bf16.mxu1 %v1600_v24  ;;  %v245_v5 = vld [vmem:[#allocation2] sm:$0xff]  ;;  %v1668_v12 = vld [vmem:[%s2090_s20 + $0x114] ss:$8 sps:$4 sm:$0xff]   ;;  %v1666_v14 = vld [vmem:[%s2090_s20 + $0x110] ss:$8 sps:$4 sm:$0xff]   ;;  %s2317_s21 = smov (!%p240_p5, %s1340_s21), 3 }
  0x72   : > { %1135 = vmatprep.subr.bf16.mxu0 %v1602_v25  ;;  %v249_v6 = vld [vmem:[#allocation2 + $0x20] sm:$0xff]  ;;  %v253_v10 = vpack.c.bf16 %v245_v5, %v245_v5  ;;  %v1671_v13 = vld [vmem:[%s2090_s20 + $0x314] ss:$8 sps:$4 sm:$0xff]   ;;  %v1669_v15 = vld [vmem:[%s2090_s20 + $0x310] ss:$8 sps:$4 sm:$0xff]   ;;  %s242_s29 = scalar_lea.vmem %s2284_s2, %s2317_s21  ;;  %s1475_s22 = sshll.u32 %s1892_s15, 8 }
  0x73   : > { %v1665_v7 = vld [vmem:[%s2090_s20 + $0x304] ss:$8 sps:$4 sm:$0xff]   ;;  %v1663_v9 = vld [vmem:[%s2090_s20 + $0x300] ss:$8 sps:$4 sm:$0xff]   ;;  %v257_v11 = vpack.c.bf16 %v249_v6, %v249_v6  ;;  %v1680_v20 = vld [vmem:[%s2090_s20 + $0x134] ss:$8 sps:$4 sm:$0xff]   ;;  %s2233_s27 = scalar_lea.hbm %s2285_s3, %s1475_s22 }
  0x74   : > { %1054 = vmatpush1.bf16.msra.mxu1 %v1604_v26  ;;  %v1674_v16 = vld [vmem:[%s2090_s20 + $0x124] ss:$8 sps:$4 sm:$0xff]   ;;  %v1672_v18 = vld [vmem:[%s2090_s20 + $0x120] ss:$8 sps:$4 sm:$0xff]   ;;  %v1683_v21 = vld [vmem:[%s2090_s20 + $0x334] ss:$8 sps:$4 sm:$0xff]  }
  0x75   : > { %1136 = vmatpush1.bf16.msra.mxu0 %v1605_v27  ;;  %1055 = vmatprep.subr.bf16.mxu1 %v1606_v28  ;;  %v1677_v17 = vld [vmem:[%s2090_s20 + $0x324] ss:$8 sps:$4 sm:$0xff]   ;;  %v1675_v19 = vld [vmem:[%s2090_s20 + $0x320] ss:$8 sps:$4 sm:$0xff]   ;;  %v1678_v22 = vld [vmem:[%s2090_s20 + $0x130] ss:$8 sps:$4 sm:$0xff]  }
  0x76   : > { %1137 = vmatprep.subr.bf16.mxu0 %v1608_v29  ;;  %v1681_v23 = vld [vmem:[%s2090_s20 + $0x330] ss:$8 sps:$4 sm:$0xff]   ;;  %v1686_v24 = vld [vmem:[%s2090_s20 + $0x144] ss:$8 sps:$4 sm:$0xff]   ;;  %v1684_v26 = vld [vmem:[%s2090_s20 + $0x140] ss:$8 sps:$4 sm:$0xff]  }
  0x77   : > { %v1689_v25 = vld [vmem:[%s2090_s20 + $0x344] ss:$8 sps:$4 sm:$0xff]   ;;  %v1687_v27 = vld [vmem:[%s2090_s20 + $0x340] ss:$8 sps:$4 sm:$0xff]   ;;  %v1692_v28 = vld [vmem:[%s2090_s20 + $0x154] ss:$8 sps:$4 sm:$0xff]  }
  0x78   : > { %1056 = vmatpush1.bf16.msra.mxu1 %v1610_v30  ;;  %v1695_v29 = vld [vmem:[%s2090_s20 + $0x354] ss:$8 sps:$4 sm:$0xff]   ;;  %v1690_v30 = vld [vmem:[%s2090_s20 + $0x150] ss:$8 sps:$4 sm:$0xff]   ;;  %v1708_v46 = vld [vmem:[%s2090_s20 + $0x180] ss:$8 sps:$4 sm:$0xff]  }
  0x79   : > { %1138 = vmatpush1.bf16.msra.mxu0 %v1611_v31  ;;  %1057 = vmatprep.subr.bf16.mxu1 %v1612_v32  ;;  %v1693_v31 = vld [vmem:[%s2090_s20 + $0x350] ss:$8 sps:$4 sm:$0xff]   ;;  %v1698_v32 = vld [vmem:[%s2090_s20 + $0x164] ss:$8 sps:$4 sm:$0xff]   ;;  %v1716_v48 = vld [vmem:[%s2090_s20 + $0x194] ss:$8 sps:$4 sm:$0xff]  }
  0x7a   : > { %1139 = vmatprep.subr.bf16.mxu0 %v1614_v33  ;;  %v1701_v33 = vld [vmem:[%s2090_s20 + $0x364] ss:$8 sps:$4 sm:$0xff]   ;;  %v1714_v50 = vld [vmem:[%s2090_s20 + $0x190] ss:$8 sps:$4 sm:$0xff]   ;;  %v1744_v6 = vld [vmem:[%s2090_s20 + $0x1e0] ss:$8 sps:$4 sm:$0xff]  }
  0x7b   : > { %v1725_v53 = vld [vmem:[%s2090_s20 + $0x3a4] ss:$8 sps:$4 sm:$0xff]   ;;  %s237_s5 = scalar_lea.vmem [#allocation7], %s1339_s18  ;;  %s1208_s15 = scalar_lea.sflag [#allocation4], %s2086_s8 }
  0x7c   : > { %1058 = vmatpush1.bf16.msra.mxu1 %v1616_v34  ;;  %v248_v34 = vld [vmem:[#allocation2 + $0x18] sm:$0xff]  ;;  %v1749_v5 = vld [vmem:[%s2090_s20 + $0x3e4] ss:$8 sps:$4 sm:$0xff]   ;;  %s1224_s6 = sshll.u32 %s237_s5, 4  ;;  %p2306_p11 = scmp.ne.s32.totalorder %s2295_s24, 0  ;;  %s2235_s6 = int_to_ptr.vmem [resolvable:$true] %s1224_s6 }
  0x7d   : > { %1140 = vmatpush1.bf16.msra.mxu0 %v1617_v35  ;;  %1059 = vmatprep.subr.bf16.mxu1 %v1618_v36  ;;  %v256_v35 = vpack.c.bf16 %v248_v34, %v248_v34  ;;  %v252_v36 = vld [vmem:[#allocation2 + $0x38] sm:$0xff]  ;;  %s1814_s7 = scalar_lea.vmem %s2235_s6, 256  ;;  %s1907_s9 = smov [#allocation7]  }
  0x7e   : > { %1141 = vmatprep.subr.bf16.mxu0 %v1620_v37  ;;  %v1696_v37 = vld [vmem:[%s2090_s20 + $0x160] ss:$8 sps:$4 sm:$0xff]   ;;  %p1815_p10 = scmp.ne.s32.totalorder %s2235_s6, %s1814_s7  ;;  %s1818_s10 = sshll.u32 %s1907_s9, 4  ;;  %s1819_s10 = int_to_ptr.vmem [resolvable:$false] %s1818_s10 }
  0x7f   : > { %s1820_s30 = scalar_lea.vmem %s1819_s10, 512  ;;  %p1821_p9 = scmp.lt.s32.totalorder %s2235_s6, %s1819_s10 }
  0x80   : > { %1060 = vmatpush1.bf16.msra.mxu1 %v1622_v38  ;;  %v1699_v38 = vld [vmem:[%s2090_s20 + $0x360] ss:$8 sps:$4 sm:$0xff]   ;;  %p1816_p1 = pnand %p1815_p10, %p2306_p11  ;;  %p1822_p3 = scmp.lt.s32.totalorder %s1820_s30, %s1814_s7 }
  0x81   : > { %1142 = vmatpush1.bf16.msra.mxu0 %v1623_v39  ;;  %1061 = vmatprep.subr.bf16.mxu1 %v1624_v40  ;;  %v260_v39 = vpack.c.bf16 %v252_v36, %v252_v36  ;;  %v1704_v40 = vld [vmem:[%s2090_s20 + $0x174] ss:$8 sps:$4 sm:$0xff]  }
  0x82   : > { %1143 = vmatprep.subr.bf16.mxu0 %v1626_v41  ;;  %v1707_v41 = vld [vmem:[%s2090_s20 + $0x374] ss:$8 sps:$4 sm:$0xff]   ;;  %p1817_p0 = pneg %p1816_p1  ;;  %p1823_p7 = por %p1822_p3, %p1821_p9 }
  0x84   : > { %1062 = vmatpush1.bf16.msra.mxu1 %v1628_v42  ;;  %v1702_v42 = vld [vmem:[%s2090_s20 + $0x170] ss:$8 sps:$4 sm:$0xff]   ;;  %p1824_p13 = pnand %p1823_p7, %p1817_p0 }
  0x85   : > { %1144 = vmatpush1.bf16.msra.mxu0 %v1629_v43  ;;  %1063 = vmatprep.subr.bf16.mxu1 %v1630_v44  ;;  %v1705_v43 = vld [vmem:[%s2090_s20 + $0x370] ss:$8 sps:$4 sm:$0xff]   ;;  %v1710_v44 = vld [vmem:[%s2090_s20 + $0x184] ss:$8 sps:$4 sm:$0xff]  }
  0x86   : > { %1145 = vmatprep.subr.bf16.mxu0 %v1632_v45  ;;  %v1713_v45 = vld [vmem:[%s2090_s20 + $0x384] ss:$8 sps:$4 sm:$0xff]  }
  0x88   : > { %1064 = vmatpush1.bf16.msra.mxu1 %v1634_v47  ;;  %v1711_v47 = vld [vmem:[%s2090_s20 + $0x380] ss:$8 sps:$4 sm:$0xff]  }
  0x89   : > { %1146 = vmatpush1.bf16.msra.mxu0 %v1635_v49  ;;  %1065 = vmatprep.subr.bf16.mxu1 %v1636_v51  ;;  %v1719_v49 = vld [vmem:[%s2090_s20 + $0x394] ss:$8 sps:$4 sm:$0xff]   ;;  %v1717_v51 = vld [vmem:[%s2090_s20 + $0x390] ss:$8 sps:$4 sm:$0xff]  }
  0x8a   : > { %1147 = vmatprep.subr.bf16.mxu0 %v1638_v52  ;;  %v1722_v52 = vld [vmem:[%s2090_s20 + $0x1a4] ss:$8 sps:$4 sm:$0xff]  }
  0x8c   : > { %1066 = vmatpush1.bf16.msra.mxu1 %v1640_v54  ;;  %v1720_v54 = vld [vmem:[%s2090_s20 + $0x1a0] ss:$8 sps:$4 sm:$0xff]  }
  0x8d   : > { %1148 = vmatpush1.bf16.msra.mxu0 %v1641_v55  ;;  %1067 = vmatprep.subr.bf16.mxu1 %v1642_v56  ;;  %v1723_v55 = vld [vmem:[%s2090_s20 + $0x3a0] ss:$8 sps:$4 sm:$0xff]   ;;  %v1728_v56 = vld [vmem:[%s2090_s20 + $0x1b4] ss:$8 sps:$4 sm:$0xff]  }
  0x8e   : > { %1149 = vmatprep.subr.bf16.mxu0 %v1644_v57  ;;  %v1731_v57 = vld [vmem:[%s2090_s20 + $0x3b4] ss:$8 sps:$4 sm:$0xff]  }
  0x90   : > { %1068 = vmatpush1.bf16.msra.mxu1 %v1646_v58  ;;  %v1726_v58 = vld [vmem:[%s2090_s20 + $0x1b0] ss:$8 sps:$4 sm:$0xff]  }
  0x91   : > { %1150 = vmatpush1.bf16.msra.mxu0 %v1647_v59  ;;  %1069 = vmatprep.subr.bf16.mxu1 %v1648_v60  ;;  %v1729_v59 = vld [vmem:[%s2090_s20 + $0x3b0] ss:$8 sps:$4 sm:$0xff]   ;;  %v1734_v60 = vld [vmem:[%s2090_s20 + $0x1c4] ss:$8 sps:$4 sm:$0xff]  }
  0x92   : > { %1151 = vmatprep.subr.bf16.mxu0 %v1650_v61  ;;  %v1737_v61 = vld [vmem:[%s2090_s20 + $0x3c4] ss:$8 sps:$4 sm:$0xff]  }
  0x94   : > { %1070 = vmatpush1.bf16.msra.mxu1 %v1652_v62  ;;  %v1732_v62 = vld [vmem:[%s2090_s20 + $0x1c0] ss:$8 sps:$4 sm:$0xff]  }
  0x95   : > { %1152 = vmatpush1.bf16.msra.mxu0 %v1653_v63  ;;  %1071 = vmatprep.subr.bf16.mxu1 %v1654_v0  ;;  %v1735_v63 = vld [vmem:[%s2090_s20 + $0x3c0] ss:$8 sps:$4 sm:$0xff]   ;;  %v1740_v0 = vld [vmem:[%s2090_s20 + $0x1d4] ss:$8 sps:$4 sm:$0xff]  }
  0x96   : > { %1153 = vmatprep.subr.bf16.mxu0 %v1656_v1  ;;  %v1743_v1 = vld [vmem:[%s2090_s20 + $0x3d4] ss:$8 sps:$4 sm:$0xff]  }
  0x98   : > { %1072 = vmatpush1.bf16.msra.mxu1 %v1658_v2  ;;  %v1738_v2 = vld [vmem:[%s2090_s20 + $0x1d0] ss:$8 sps:$4 sm:$0xff]  }
  0x99   : > { %1154 = vmatpush1.bf16.msra.mxu0 %v1659_v3  ;;  %1082 = vmatprep.subr.bf16.mxu1 %v1662_v4  ;;  %v1741_v3 = vld [vmem:[%s2090_s20 + $0x3d0] ss:$8 sps:$4 sm:$0xff]   ;;  %v1746_v4 = vld [vmem:[%s2090_s20 + $0x1e4] ss:$8 sps:$4 sm:$0xff]  }
  0x9a   : > { %1164 = vmatprep.subr.bf16.mxu0 %v1665_v7  ;;  %v1747_v7 = vld [vmem:[%s2090_s20 + $0x3e0] ss:$8 sps:$4 sm:$0xff]  }
  0x9b   : > { %1074 = vmatmul.mubr.bf16.vlgmr.msra.gmra.mrb[0].mxu1 %v253_v10  ;;  %v1750_v10 = vld [vmem:[%s2090_s20 + $0x1f0] ss:$8 sps:$4 sm:$0xff]  }
  0x9c   : > { %1156 = vmatmul.mubr.bf16.vlgmr.msra.gmra.mrb[0].mxu0 %v257_v11  ;;  %1083 = vmatpush1.bf16.msra.mxu1 %v1660_v8  ;;  %v1752_v8 = vld [vmem:[%s2090_s20 + $0x1f4] ss:$8 sps:$4 sm:$0xff]   ;;  %v1753_v11 = vld [vmem:[%s2090_s20 + $0x3f0] ss:$8 sps:$4 sm:$0xff]  }
  0x9d   : > { %1165 = vmatpush1.bf16.msra.mxu0 %v1663_v9  ;;  %1084 = vmatprep.subr.bf16.mxu1 %v1668_v12  ;;  %v1755_v9 = vld [vmem:[%s2090_s20 + $0x3f4] ss:$8 sps:$4 sm:$0xff]  }
  0x9e   : > { %1166 = vmatprep.subr.bf16.mxu0 %v1671_v13  ;;  %1114 = vmatprep.mubr.bf16.mxu1 %v256_v35  ;;  %v247_v12 = vld [vmem:[#allocation2 + $0x10] sm:$0xff] }
  0x9f   : > { %1196 = vmatprep.mubr.bf16.mxu0 %v260_v39  ;;  %v251_v13 = vld [vmem:[#allocation2 + $0x30] sm:$0xff] }
  0xa0   : > { %1085 = vmatpush1.bf16.msra.mxu1 %v1666_v14  ;;  %v255_v14 = vpack.c.bf16 %v247_v12, %v247_v12 }
  0xa1   : > { %1167 = vmatpush1.bf16.msra.mxu0 %v1669_v15  ;;  %1086 = vmatprep.subr.bf16.mxu1 %v1674_v16  ;;  %v259_v15 = vpack.c.bf16 %v251_v13, %v251_v13  ;;  %v391_v16 = vlaneseq }
  0xa2   : > { %1168 = vmatprep.subr.bf16.mxu0 %v1677_v17 }
  0xa3   : > { %v392_v17 = vshrl.u32 %v391_v16, 7 }
  0xa4   : > { %1087 = vmatpush1.bf16.msra.mxu1 %v1672_v18 }
  0xa5   : > { %1169 = vmatpush1.bf16.msra.mxu0 %v1675_v19  ;;  %1088 = vmatprep.subr.bf16.mxu1 %v1680_v20  ;;  %v393_v18 = vsub.s32 0, %v392_v17  ;;  %v389_v19 = vld [vmem:[%s242_s29] sm:$0x3]  ;;  %v397_v20 = vsub.s32 1, %v392_v17 }
  0xa6   : > { %1170 = vmatprep.subr.bf16.mxu0 %v1683_v21 }
  0xa7   : > { %v394_v21 = vrot.slane %v389_v19, %v393_v18 }
  0xa8   : > { %1089 = vmatpush1.bf16.msra.mxu1 %v1678_v22  ;;  %v398_v22 = vrot.slane %v389_v19, %v397_v20 }
  0xa9   : > { %1171 = vmatpush1.bf16.msra.mxu0 %v1681_v23  ;;  %1090 = vmatprep.subr.bf16.mxu1 %v1686_v24 }
  0xaa   : > { %1172 = vmatprep.subr.bf16.mxu0 %v1689_v25 }
  0xac   : > { %1091 = vmatpush1.bf16.msra.mxu1 %v1684_v26 }
  0xad   : > { %1173 = vmatpush1.bf16.msra.mxu0 %v1687_v27  ;;  %1092 = vmatprep.subr.bf16.mxu1 %v1692_v28 }
  0xae   : > { %1174 = vmatprep.subr.bf16.mxu0 %v1695_v29 }
  0xb0   : > { %1093 = vmatpush1.bf16.msra.mxu1 %v1690_v30 }
  0xb1   : > { %1175 = vmatpush1.bf16.msra.mxu0 %v1693_v31  ;;  %1094 = vmatprep.subr.bf16.mxu1 %v1698_v32 }
  0xb2   : > { %1176 = vmatprep.subr.bf16.mxu0 %v1701_v33 }
  0xb4   : > { %1095 = vmatpush1.bf16.msra.mxu1 %v1696_v37 }
  0xb5   : > { %1177 = vmatpush1.bf16.msra.mxu0 %v1699_v38  ;;  %1096 = vmatprep.subr.bf16.mxu1 %v1704_v40 }
  0xb6   : > { %1178 = vmatprep.subr.bf16.mxu0 %v1707_v41 }
  0xb8   : > { %1097 = vmatpush1.bf16.msra.mxu1 %v1702_v42 }
  0xb9   : > { %1179 = vmatpush1.bf16.msra.mxu0 %v1705_v43  ;;  %1098 = vmatprep.subr.bf16.mxu1 %v1710_v44 }
  0xba   : > { %1180 = vmatprep.subr.bf16.mxu0 %v1713_v45 }
  0xbc   : > { %1099 = vmatpush1.bf16.msra.mxu1 %v1708_v46 }
  0xbd   : > { %1181 = vmatpush1.bf16.msra.mxu0 %v1711_v47  ;;  %1100 = vmatprep.subr.bf16.mxu1 %v1716_v48 }
  0xbe   : > { %1182 = vmatprep.subr.bf16.mxu0 %v1719_v49 }
  0xc0   : > { %1101 = vmatpush1.bf16.msra.mxu1 %v1714_v50 }
  0xc1   : > { %1183 = vmatpush1.bf16.msra.mxu0 %v1717_v51  ;;  %1102 = vmatprep.subr.bf16.mxu1 %v1722_v52 }
  0xc2   : > { %1184 = vmatprep.subr.bf16.mxu0 %v1725_v53 }
  0xc4   : > { %1103 = vmatpush1.bf16.msra.mxu1 %v1720_v54 }
  0xc5   : > { %1185 = vmatpush1.bf16.msra.mxu0 %v1723_v55  ;;  %1104 = vmatprep.subr.bf16.mxu1 %v1728_v56 }
  0xc6   : > { %1186 = vmatprep.subr.bf16.mxu0 %v1731_v57 }
  0xc8   : > { %1105 = vmatpush1.bf16.msra.mxu1 %v1726_v58 }
  0xc9   : > { %1187 = vmatpush1.bf16.msra.mxu0 %v1729_v59  ;;  %1106 = vmatprep.subr.bf16.mxu1 %v1734_v60 }
  0xca   : > { %1188 = vmatprep.subr.bf16.mxu0 %v1737_v61 }
  0xcc   : > { %1107 = vmatpush1.bf16.msra.mxu1 %v1732_v62 }
  0xcd   : > { %1189 = vmatpush1.bf16.msra.mxu0 %v1735_v63  ;;  %1108 = vmatprep.subr.bf16.mxu1 %v1740_v0 }
  0xce   : > { %1190 = vmatprep.subr.bf16.mxu0 %v1743_v1 }
  0xd0   : > { %1109 = vmatpush1.bf16.msra.mxu1 %v1738_v2 }
  0xd1   : > { %1191 = vmatpush1.bf16.msra.mxu0 %v1741_v3  ;;  %1110 = vmatprep.subr.bf16.mxu1 %v1746_v4 }
  0xd2   : > { %1192 = vmatprep.subr.bf16.mxu0 %v1749_v5 }
  0xd4   : > { %1111 = vmatpush1.bf16.msra.mxu1 %v1744_v6 }
  0xd5   : > { %1193 = vmatpush1.bf16.msra.mxu0 %v1747_v7  ;;  %1112 = vmatprep.subr.bf16.mxu1 %v1752_v8 }
  0xd6   : > { %1194 = vmatprep.subr.bf16.mxu0 %v1755_v9 }
  0xd8   : > { %1113 = vmatpush1.bf16.msra.mxu1 %v1750_v10 }
  0xd9   : > { %1195 = vmatpush1.bf16.msra.mxu0 %v1753_v11 }
  0xdb   : > { %1115 = vmatmul.mubr.bf16.vlgmr.msra.gmra.mrb[0].mxu1 %v255_v14 }
  0xdc   : > { %1197 = vmatmul.mubr.bf16.vlgmr.msra.gmra.mrb[0].mxu0 %v259_v15 }
 0x1ae   : > { %v1116_v23 = vpop.f32.mrb[0].mxu1 }
 0x1af   : > { %v1198_v24 = vpop.f32.mrb[0].mxu0  ;;  %v1476_v25 = vadd.f32 %v1116_v23, %v394_v21  ;;  %v1118_v26 = vpop.f32.mrb[1].mxu1 }
 0x1b0   : > { %v1200_v27 = vpop.f32.mrb[1].mxu0  ;;  %v1478_v28 = vadd.f32 %v1118_v26, %v398_v22  ;;  %v1120_v29 = vpop.f32.mrb[2].mxu1 }
 0x1b1   : > { %v1202_v30 = vpop.f32.mrb[2].mxu0  ;;  %v1477_v31 = vadd.f32 %v1476_v25, %v1198_v24  ;;  %v1121_v32 = vpop.f32.mrb[3].mxu1 }
 0x1b2   : > { %v1203_v33 = vpop.f32.mrb[3].mxu0  ;;  %v1479_v34 = vadd.f32 %v1478_v28, %v1200_v27 }
 0x1b3   : > { %1205 = vst [vmem:[%s237_s5] sm:$0xff] %v1477_v31 }
 0x1b4   : > { %1206 = vst [vmem:[%s237_s5 + $0x8] sm:$0xff] %v1479_v34 }
 0x1b5   : > { %1827 = shalt.err (!%p1824_p13)
}
 0x1b6   : > { %s1828_s8 = scalar_lea.hbm %s2233_s27, 256  ;;  %s1832_s23 = scalar_lea.hbm %s2285_s3, 512 }
 0x1b7   : > { %p1829_p2 = scmp.ne.s32.totalorder %s2233_s27, %s1828_s8  ;;  %p1833_p4 = scmp.lt.u32.totalorder %s2233_s27, %s2285_s3 }
 0x1b8   : > { %p1834_p8 = scmp.lt.u32.totalorder %s1832_s23, %s1828_s8  ;;  %p1836_p10 = scmp.lt.u32.totalorder %s1828_s8, %s2233_s27 }
 0x1b9   : > { %p1830_p6 = pnand %p1829_p2, %p2306_p11 }
 0x1ba   : > { %p1835_p5 = por %p1834_p8, %p1833_p4 }
 0x1bb   : > { %p1831_p12 = pneg %p1830_p6 }
 0x1bc   : > { %p1837_p1 = por %p1836_p10, %p1835_p5 }
 0x1be   : > { %p1838_p0 = pnand %p1837_p1, %p1831_p12 }
 0x1c0   : > { %1841 = shalt.err (!%p1838_p0)
}
 0x1c1   : > { %1494 = dma.vmem_to_hbm [thread:$0]  (%p2306_p11), %s2235_s6, 256, %s2233_s27, %s1208_s15  }
 0x1c2 PF: > { %s1236_s18 = sand.u32 1, %s1880_s12   ;;  %p2307_p9 = scmp.ne.s32.totalorder %s2296_s25, 0 }
 0x1c3   : > { %p2308_p3 = scmp.ge.s32.totalorder %s1900_s17, 2  ;;  %s1237_s22 = scalar_lea.sflag [#allocation4], %s1236_s18 }
 0x1c5   : > { %p1505_p7 = pnand %p2308_p3, %p2307_p9 }
 0x1c7   : > { %1875 = dma.done.wait (!%p1505_p7), %s1237_s22, 256  }
 0x1c8   : > { %1877 = vsyncadd (!%p1505_p7), %s1237_s22, 4294967040  ;;  %s20_s17 = sadd.s32 1, %s1900_s17   ;;  %s2309_s12 = smov %s1884_s13 }
 0x1c9   : > { %p17_p13 = scmp.ge.s32.totalorder %s20_s17, 4   ;;  %s2310_s13 = smov %s1888_s14 }
 0x1ca   : > { %s2311_s14 = smov %s2047_s28  ;;  %s2312_s15 = smov %s1896_s16 }
 0x1cb   : > { %s2313_s16 = smov %s2315_s4  ;;  %19 = sbr.rel (!%p17_p13) target bundleno = 7 (0x7), region = 86 }
 0x1d2   :  { %1242 = vsyncpa [#allocation3], 1 }
 0x1d3   :  { %1244 = vsyncpa [#allocation3 + $0x1], 1 }
 0x1d4   :  { %1245 = vsyncpa [#allocation6], 1 }
 0x1d5   :  { %1247 = vsyncpa [#allocation6 + $0x1], 1 }
 0x1d6   :  { %1248 = vsyncpa [#allocation4], 1 }
 0x1d7   :  { %1250 = vsyncpa [#allocation4 + $0x1], 1 }

</bundles_post_ra>
